<compile_context>
chip_gen: v7x
topology: tpu7x:2x2x1
jax: 0.10.0
libtpu: 0.0.40
codegen_flags: <defaults>
</compile_context>

<pallas_src>
import jax
import jax.numpy as jnp
from jax import lax
from jax.experimental import pallas as pl
from jax.experimental.pallas import tpu as pltpu


def _mlp_kernel(x_ref, w1_ref, b1_ref, w2_ref, b2_ref, w3_ref, b3_ref, o_ref):
    # x tile arrives batch-major (tile_b, D); cast to bf16 for the MXU (no-op if stored bf16).
    xb = x_ref[...].astype(jnp.bfloat16)
    # Layer 1: contract the shared D axis of W1 (H, D) and x (tile_b, D) -> (H, tile_b).
    # NT-style dot (same dimension numbers as q @ k.T): batch lands on the 128-lane axis so
    # h1/h2 and the output are lane-dense; Mosaic inserts the small (tile_b, D) relayout.
    h1 = lax.dot_general(w1_ref[...], xb, (((1,), (1,)), ((), ())),
                         preferred_element_type=jnp.float32)
    h1 = jnp.maximum(h1 + b1_ref[...], 0.0)             # f32 epilogue (v5e-friendly)
    # Layer 2: (H, H) @ (H, tile_b) -> (H, tile_b); bf16 operands, f32 accumulation.
    h2 = jnp.dot(w2_ref[...], h1.astype(jnp.bfloat16),
                 preferred_element_type=jnp.float32)
    h2 = jnp.maximum(h2 + b2_ref[...], 0.0)
    # Layer 3 (H -> 1): f32 VPU multiply + sublane reduction; b3 is an SMEM scalar.
    out = jnp.sum(w3_ref[...] * h2, axis=0, keepdims=True) + b3_ref[0, 0]
    o_ref[...] = out.astype(o_ref.dtype)                 # (1, tile_b) lane-dense store


def _round_up(n: int, m: int) -> int:
    return -(-n // m) * m


def performance_predictor(x, params, *, tile_b=16384):
    """Fused 3-layer MLP.  x: (B, input_dim), f32 or bf16 -> (B,) float32."""
    w1, b1, w2, b2, w3, b3 = params                      # PyTorch-style layouts (see init_params)
    B, D = x.shape
    H = w1.shape[0]

    # bf16 MXU operands (tiny one-off casts of the resident weights); everything else stays f32.
    w1b = w1.astype(jnp.bfloat16)
    w2b = w2.astype(jnp.bfloat16)

    # Batch tile: lane-aligned, large enough to amortize the ~0.35us grid-step overhead, and
    # clamped so (a) a small batch is one exact block (no masking at all) and (b) a larger batch
    # always yields >= 2 grid steps so the "parallel" axis can shard across v7x's two TCs.
    tile_b = max(128, (int(tile_b) // 128) * 128)
    if B <= 128:
        tile_b = B                                        # block == full array
    else:
        tile_b = min(tile_b, _round_up(_round_up(B, 128) // 2, 128))
    grid_b = pl.cdiv(B, tile_b)                           # ragged last block masked by Pallas

    flops = 2 * B * (D * H + H * H + H)
    bytes_accessed = (int(x.size) * x.dtype.itemsize
                      + sum(int(p.size) * p.dtype.itemsize for p in params)
                      + B * 4)

    out = pl.pallas_call(
        _mlp_kernel,
        out_shape=jax.ShapeDtypeStruct((1, B), jnp.float32),
        grid_spec=pltpu.PrefetchScalarGridSpec(
            num_scalar_prefetch=0,
            grid=(grid_b,),
            in_specs=[
                pl.BlockSpec((tile_b, D), lambda i: (i, 0)),   # x tile, batch-major, no wrapper pad
                pl.BlockSpec(w1b.shape, lambda i: (0, 0)),     # W1 (H, D)  bf16, resident
                pl.BlockSpec(b1.shape, lambda i: (0, 0)),      # b1 (H, 1)  f32
                pl.BlockSpec(w2b.shape, lambda i: (0, 0)),     # W2 (H, H)  bf16
                pl.BlockSpec(b2.shape, lambda i: (0, 0)),      # b2 (H, 1)  f32
                pl.BlockSpec(w3.shape, lambda i: (0, 0)),      # W3 (H, 1)  f32
                pl.BlockSpec(memory_space=pltpu.SMEM),         # b3 (1, 1)  scalar in SMEM
            ],
            out_specs=pl.BlockSpec((1, tile_b), lambda i: (0, i)),
        ),
        compiler_params=pltpu.CompilerParams(
            dimension_semantics=("parallel",),
            vmem_limit_bytes=32 * 1024 * 1024),
        cost_estimate=pl.CostEstimate(
            flops=int(flops), transcendentals=0, bytes_accessed=int(bytes_accessed)),
    )(x, w1b, b1, w2b, b2, w3, b3)

    return out[0]                                         # (B,)  == squeeze(1)


def init_params(key, input_dim=4, hidden_dim=32):
    """Deterministic synthetic params, PyTorch-equivalent shapes.

    w1/w2 use the PyTorch (out_features, in_features) layout; w3 is stored as
    (hidden_dim, 1) (transpose of PyTorch's (1, hidden_dim)); biases are kept 2-D as
    (out_features, 1) for lane-broadcasting in the feature-major kernel.
    """
    k1, k2, k3, k4, k5, k6 = jax.random.split(key, 6)
    w1 = jax.random.normal(k1, (hidden_dim, input_dim), jnp.float32) * 0.1
    b1 = jax.random.normal(k2, (hidden_dim, 1), jnp.float32) * 0.1
    w2 = jax.random.normal(k3, (hidden_dim, hidden_dim), jnp.float32) * 0.1
    b2 = jax.random.normal(k4, (hidden_dim, 1), jnp.float32) * 0.1
    w3 = jax.random.normal(k5, (hidden_dim, 1), jnp.float32) * 0.1
    b3 = jax.random.normal(k6, (1, 1), jnp.float32) * 0.1
    return (w1, b1, w2, b2, w3, b3)


def _reference(x, params):
    w1, b1, w2, b2, w3, b3 = params
    h1 = jnp.maximum(x @ w1.T + b1[:, 0], 0.0)
    h2 = jnp.maximum(h1 @ w2.T + b2[:, 0], 0.0)
    return (h2 @ w3 + b3[0])[:, 0]


if __name__ == "__main__":
    key = jax.random.PRNGKey(0)
    kx, kp, kx2 = jax.random.split(key, 3)

    input_dim, hidden_dim = 4, 32
    params = init_params(kp, input_dim=input_dim, hidden_dim=hidden_dim)

    # Small shape consistent with the module's forward: x (B, input_dim) -> (B,).
    B = 8
    x = jax.random.normal(kx, (B, input_dim), jnp.float32)
    y = jax.block_until_ready(performance_predictor(x, params))
    y_ref = _reference(x, params)
    assert y.shape == (B,)
    assert jnp.allclose(y, y_ref, atol=3e-2, rtol=3e-2)   # bf16 MXU operands -> relaxed tol

    # Multi-tile path (grid > 1, ragged last block) — exercises the pipeline + masked tail.
    B2 = 600
    x2 = jax.random.normal(kx2, (B2, input_dim), jnp.float32)
    y2 = jax.block_until_ready(performance_predictor(x2, params, tile_b=256))
    y2_ref = _reference(x2, params)
    assert y2.shape == (B2,)
    assert jnp.allclose(y2, y2_ref, atol=3e-2, rtol=3e-2)

    # Optional bf16 storage for x (HBM-bandwidth lever when x is already produced in bf16);
    # the kernel path is identical — it feeds the MXU bf16 either way.
    y2_bf16 = jax.block_until_ready(
        performance_predictor(x2.astype(jnp.bfloat16), params, tile_b=256))
    assert jnp.allclose(y2_bf16, y2_ref, atol=5e-2, rtol=5e-2)

    print("KERNEL_OK")
</pallas_src>

<mosaic_0001>
module attributes {stable_mosaic.version = 11 : i64} {
  func.func @_mlp_kernel(%arg0: i32, %arg1: memref<8x4xf32, #tpu.memory_space<vmem>>, %arg2: memref<32x4xbf16, #tpu.memory_space<vmem>>, %arg3: memref<32x1xf32, #tpu.memory_space<vmem>>, %arg4: memref<32x32xbf16, #tpu.memory_space<vmem>>, %arg5: memref<32x1xf32, #tpu.memory_space<vmem>>, %arg6: memref<32x1xf32, #tpu.memory_space<vmem>>, %arg7: memref<1x1xf32, #tpu.memory_space<smem>>, %arg8: memref<1x8xf32, #tpu.memory_space<vmem>>) attributes {dimension_semantics = [#tpu.dimension_semantics<parallel>], iteration_bounds = array<i64: 1>, scalar_prefetch = 0 : i64, scratch_operands = 0 : i64, tpu.core_type = #tpu.core_type<tc>, window_params = [{transform_indices = @transform_0, window_bounds = array<i64: 8, 4>}, {pipeline_mode = #tpu.pipeline_mode<synchronous>, transform_indices = @transform_1, window_bounds = array<i64: 32, 4>}, {pipeline_mode = #tpu.pipeline_mode<synchronous>, transform_indices = @transform_2, window_bounds = array<i64: 32, 1>}, {pipeline_mode = #tpu.pipeline_mode<synchronous>, transform_indices = @transform_3, window_bounds = array<i64: 32, 32>}, {pipeline_mode = #tpu.pipeline_mode<synchronous>, transform_indices = @transform_4, window_bounds = array<i64: 32, 1>}, {pipeline_mode = #tpu.pipeline_mode<synchronous>, transform_indices = @transform_5, window_bounds = array<i64: 32, 1>}, {transform_indices = @transform_6, window_bounds = array<i64: 1, 1>}, {transform_indices = @transform_7, window_bounds = array<i64: 1, 8>}]} {
    %c0 = arith.constant 0 : index
    %c0_0 = arith.constant 0 : index
    %0 = vector.load %arg1[%c0, %c0_0] : memref<8x4xf32, #tpu.memory_space<vmem>>, vector<8x4xf32>
    %1 = arith.truncf %0 : vector<8x4xf32> to vector<8x4xbf16>
    %c0_1 = arith.constant 0 : index
    %c0_2 = arith.constant 0 : index
    %2 = vector.load %arg2[%c0_1, %c0_2] : memref<32x4xbf16, #tpu.memory_space<vmem>>, vector<32x4xbf16>
    %cst = arith.constant dense<0.000000e+00> : vector<32x8xf32>
    %3 = tpu.matmul %2, %1, %cst {dimension_numbers = #tpu.dot_dimension_numbers<[1], [1], [0], [0], [0, 0, 1, 0], [], []>} : vector<32x4xbf16>, vector<8x4xbf16>, vector<32x8xf32> -> vector<32x8xf32>
    %c0_3 = arith.constant 0 : index
    %c0_4 = arith.constant 0 : index
    %4 = vector.load %arg3[%c0_3, %c0_4] : memref<32x1xf32, #tpu.memory_space<vmem>>, vector<32x1xf32>
    %5 = vector.broadcast %4 : vector<32x1xf32> to vector<32x8xf32>
    %6 = arith.addf %3, %5 : vector<32x8xf32>
    %cst_5 = arith.constant 0.000000e+00 : f32
    %7 = vector.broadcast %cst_5 : f32 to vector<32x8xf32>
    %8 = arith.maximumf %6, %7 : vector<32x8xf32>
    %c0_6 = arith.constant 0 : index
    %c0_7 = arith.constant 0 : index
    %9 = vector.load %arg4[%c0_6, %c0_7] : memref<32x32xbf16, #tpu.memory_space<vmem>>, vector<32x32xbf16>
    %10 = arith.truncf %8 : vector<32x8xf32> to vector<32x8xbf16>
    %cst_8 = arith.constant dense<0.000000e+00> : vector<32x8xf32>
    %11 = tpu.matmul %9, %10, %cst_8 {dimension_numbers = #tpu.dot_dimension_numbers<[1], [0], [0], [1], [0, 0, 1, 1], [], []>} : vector<32x32xbf16>, vector<32x8xbf16>, vector<32x8xf32> -> vector<32x8xf32>
    %c0_9 = arith.constant 0 : index
    %c0_10 = arith.constant 0 : index
    %12 = vector.load %arg5[%c0_9, %c0_10] : memref<32x1xf32, #tpu.memory_space<vmem>>, vector<32x1xf32>
    %13 = vector.broadcast %12 : vector<32x1xf32> to vector<32x8xf32>
    %14 = arith.addf %11, %13 : vector<32x8xf32>
    %cst_11 = arith.constant 0.000000e+00 : f32
    %15 = vector.broadcast %cst_11 : f32 to vector<32x8xf32>
    %16 = arith.maximumf %14, %15 : vector<32x8xf32>
    %c0_12 = arith.constant 0 : index
    %c0_13 = arith.constant 0 : index
    %17 = vector.load %arg6[%c0_12, %c0_13] : memref<32x1xf32, #tpu.memory_space<vmem>>, vector<32x1xf32>
    %18 = vector.broadcast %17 : vector<32x1xf32> to vector<32x8xf32>
    %19 = arith.mulf %18, %16 : vector<32x8xf32>
    %cst_14 = arith.constant dense<0.000000e+00> : vector<8xf32>
    %20 = vector.multi_reduction <add>, %19, %cst_14 [0] : vector<32x8xf32> to vector<8xf32>
    %21 = vector.shape_cast %20 : vector<8xf32> to vector<1x8xf32>
    %c0_15 = arith.constant 0 : index
    %c0_16 = arith.constant 0 : index
    %22 = memref.load %arg7[%c0_15, %c0_16] : memref<1x1xf32, #tpu.memory_space<smem>>
    %23 = vector.broadcast %22 : f32 to vector<1x8xf32>
    %24 = arith.addf %21, %23 : vector<1x8xf32>
    %c0_17 = arith.constant 0 : index
    %c0_18 = arith.constant 0 : index
    %25 = vector.load %arg8[%c0_17, %c0_18] : memref<1x8xf32, #tpu.memory_space<vmem>>, vector<1x8xf32>
    tpu.vector_store %arg8[%c0_17, %c0_18], %24 {strides = array<i32>} : memref<1x8xf32, #tpu.memory_space<vmem>>, vector<1x8xf32>,
    return
  }
  func.func @transform_0(%arg0: i32) -> (i32, i32) {
    %c0_i32 = arith.constant 0 : i32
    %c0_i32_0 = arith.constant 0 : i32
    return %arg0, %c0_i32 : i32, i32
  }
  func.func @transform_1(%arg0: i32) -> (i32, i32) {
    %c0_i32 = arith.constant 0 : i32
    %c0_i32_0 = arith.constant 0 : i32
    %c0_i32_1 = arith.constant 0 : i32
    return %c0_i32, %c0_i32_0 : i32, i32
  }
  func.func @transform_2(%arg0: i32) -> (i32, i32) {
    %c0_i32 = arith.constant 0 : i32
    %c0_i32_0 = arith.constant 0 : i32
    %c0_i32_1 = arith.constant 0 : i32
    return %c0_i32, %c0_i32_0 : i32, i32
  }
  func.func @transform_3(%arg0: i32) -> (i32, i32) {
    %c0_i32 = arith.constant 0 : i32
    %c0_i32_0 = arith.constant 0 : i32
    %c0_i32_1 = arith.constant 0 : i32
    return %c0_i32, %c0_i32_0 : i32, i32
  }
  func.func @transform_4(%arg0: i32) -> (i32, i32) {
    %c0_i32 = arith.constant 0 : i32
    %c0_i32_0 = arith.constant 0 : i32
    %c0_i32_1 = arith.constant 0 : i32
    return %c0_i32, %c0_i32_0 : i32, i32
  }
  func.func @transform_5(%arg0: i32) -> (i32, i32) {
    %c0_i32 = arith.constant 0 : i32
    %c0_i32_0 = arith.constant 0 : i32
    %c0_i32_1 = arith.constant 0 : i32
    return %c0_i32, %c0_i32_0 : i32, i32
  }
  func.func @transform_6(%arg0: i32) -> (i32, i32) {
    %c0_i32 = arith.constant 0 : i32
    %c0_i32_0 = arith.constant 0 : i32
    %c0_i32_1 = arith.constant 0 : i32
    return %c0_i32, %c0_i32_0 : i32, i32
  }
  func.func @transform_7(%arg0: i32) -> (i32, i32) {
    %c0_i32 = arith.constant 0 : i32
    %c0_i32_0 = arith.constant 0 : i32
    return %c0_i32, %arg0 : i32, i32
  }
}

</mosaic_0001>

<bundles_post_ra>
// kernel: tpu_custom_call.1
= control target key start
LH: loop header
LB: loop body
LE: loop exit
PB: predicated region body
PF: predicated region fallthrough
CT: control target
= control target key end

     0   :  { %vm69_vm0 = vcmask 31744   ;;  %v355_v3 = vmov 0   ;;  %s469_s0 = inlined_call_operand.vmem [shape: f32[8,4], index: 0, kind: input, shape index: {}]   ;;  %s470_s1 = inlined_call_operand.vmem [shape: bf16[32,4], index: 1, kind: input, shape index: {}]   ;;  %s471_s2 = inlined_call_operand.vmem [shape: f32[32,1], index: 2, kind: input, shape index: {}]   ;;  %s472_s3 = inlined_call_operand.vmem [shape: bf16[32,32], index: 3, kind: input, shape index: {}]   ;;  %s473_s4 = inlined_call_operand.vmem [shape: f32[32,1], index: 4, kind: input, shape index: {}]   ;;  %s474_s5 = inlined_call_operand.vmem [shape: f32[32,1], index: 5, kind: input, shape index: {}]   ;;  %s475_s6 = inlined_call_operand.<no memory space> [shape: f32[1,1], index: 6, kind: input, shape index: {}]   ;;  %s476_s7 = inlined_call_operand.hbm [shape: f32[1,8], index: 7, kind: output, shape index: {}]  }
   0x1   :  { %v29_v0 = vld [vmem:[%s469_s0] sm:$0xff]  ;;  %325 = vset.pattern.permute.xlu0 %v355_v3  ;;  %326 = vset.pattern.permute.xlu1 %v355_v3  ;;  %v37_v5 = vld [vmem:[%s471_s2 + $0x10] sm:$0xff]  ;;  %v328_v7 = vld [vmem:[%s470_s1 + $0x8] sm:$0xff]  }
   0x2   :  { %v30_v1 = vpack.c.bf16 %v29_v0, %v29_v0  ;;  %v327_v2 = vld [vmem:[%s470_s1] sm:$0xff]   ;;  %51 = vperm.xlu1 %326, %v37_v5   ;;  %v36_v8 = vld [vmem:[%s471_s2 + $0x8] sm:$0xff]  ;;  %v38_v9 = vld [vmem:[%s471_s2 + $0x18] sm:$0xff] }
   0x3   :  { %v35_v4 = vld [vmem:[%s471_s2] sm:$0xff]  ;;  %310 = vmatprep.mubr.msk.bf16.mxu0 %vm69_vm0, %v327_v2 }
   0x4   :  { %322 = vmatprep.subr.msk.bf16.mxu0 %vm69_vm0, %v30_v1  ;;  %v77_v6 = vsel %vm69_vm0, %v30_v1, 0  ;;  %41 = vperm.xlu0 %325, %v35_v4  }
   0x5   :  { %309 = vmatpush3.bf16.xpose.msra.mxu0 %v77_v6 }
   0x6   :  { %13 = vsyncpa [#allocation4], 0  ;;  %56 = vperm.xlu1 %326, %v38_v9   ;;  %v138_v10 = vld [vmem:[%s473_s4] sm:$0xff]  ;;  %v139_v11 = vld [vmem:[%s473_s4 + $0x8] sm:$0xff]  ;;  %vm172_vm1 = vcmask 261120   ;;  %vm260_vm2 = vcmask 64512  }
   0x7   :  { %v140_v12 = vld [vmem:[%s473_s4 + $0x10] sm:$0xff]  ;;  %v141_v13 = vld [vmem:[%s473_s4 + $0x18] sm:$0xff]  ;;  %v232_v14 = vld [vmem:[%s474_s5] sm:$0xff]  ;;  %s356_s8 = smov [#allocation3]   ;;  %vm277_vm3 = vcmask 57344  }
   0x8   :  { %46 = vperm.xlu0 %325, %v36_v8   ;;  %v233_v15 = vld [vmem:[%s474_s5 + $0x8] sm:$0xff]  ;;  %v234_v16 = vld [vmem:[%s474_s5 + $0x10] sm:$0xff]  ;;  %v235_v17 = vld [vmem:[%s474_s5 + $0x18] sm:$0xff]  ;;  %s285_s0 = sshll.u32 %s356_s8, 4  ;;  %s286_s0 = int_to_ptr.vmem [resolvable:$true] %s285_s0 }
   0x9   :  { %v329_v18 = vld [vmem:[%s472_s3] sm:$0xff]   ;;  %v330_v37 = vld [vmem:[%s472_s3 + $0x8] sm:$0xff]   ;;  %s331_s9 = scalar_lea.vmem %s286_s0, 16  ;;  %s335_s10 = scalar_lea.vmem %s286_s0, 32 }
   0xa   :  { %149 = vperm.xlu1 %326, %v139_v11   ;;  %318 = vmatprep.mubr.msk.bf16.mxu1 %vm172_vm1, %v329_v18  ;;  %p332_p0 = scmp.ne.s32.totalorder %s286_s0, %s331_s9  ;;  %p336_p1 = scmp.lt.s32.totalorder %s286_s0, %s286_s0 }
   0xb   :  { %p337_p2 = scmp.lt.s32.totalorder %s335_s10, %s331_s9 }
   0xc   :  { %311 = vmatmul.mubr.msk.bf16.vlgmr.msra.gmra.mrb[0].mxu0 %vm69_vm0, %v328_v7  ;;  %144 = vperm.xlu0 %325, %v138_v10   ;;  %v275_v10 = vstv %s475_s6 }
   0xd   :  { %p338_p3 = por %p337_p2, %p336_p1 }
   0xe   :  { %159 = vperm.xlu1 %326, %v141_v13  }
   0xf   :  { %p339_p4 = pnand %p338_p3, %p332_p0 }
  0x10   :  { %154 = vperm.xlu0 %325, %v140_v12  }
  0x12   :  { %243 = vperm.xlu1 %326, %v233_v15  }
  0x14   :  { %238 = vperm.xlu0 %325, %v232_v14  }
  0x16   :  { %253 = vperm.xlu1 %326, %v235_v17  }
  0x18   :  { %248 = vperm.xlu0 %325, %v234_v16  }
  0x81   :  { %v52_v19 = vpop.permute.xlu1 %51 }
  0x83   :  { %v42_v20 = vpop.permute.xlu0 %41 }
  0x85   :  { %v57_v24 = vpop.permute.xlu1 %56 }
  0x87   :  { %v47_v27 = vpop.permute.xlu0 %46 }
  0x89   :  { %v150_v39 = vpop.permute.xlu1 %149 }
  0x8b   :  { %v145_v38 = vpop.permute.xlu0 %144 }
  0x8d   :  { %v160_v41 = vpop.permute.xlu1 %159 }
  0x8f   :  { %v155_v40 = vpop.permute.xlu0 %154 }
  0x91   :  { %v244_v48 = vpop.permute.xlu1 %243 }
  0x93   :  { %v239_v43 = vpop.permute.xlu0 %238 }
  0x95   :  { %v254_v60 = vpop.permute.xlu1 %253 }
  0x97   :  { %v249_v57 = vpop.permute.xlu0 %248 }
  0xdf   :  { %v312_v21 = vpop.f32.mrb[0].mxu0 }
  0xe0   :  { %v122_v22 = vadd.f32 %v312_v21, %v52_v19  ;;  %v113_v23 = vpop.f32.mrb[1].mxu0 }
  0xe1   :  { %v114_v25 = vadd.f32 %v113_v23, %v42_v20  ;;  %v313_v26 = vpop.f32.mrb[2].mxu0 }
  0xe2   :  { %v125_v28 = vadd.f32 %v313_v26, %v57_v24  ;;  %v116_v29 = vpop.f32.mrb[3].mxu0  ;;  %v130_v31 = vmax.f32 %v122_v22, 0.0 }
  0xe3   :  { %v117_v30 = vadd.f32 %v116_v29, %v47_v27  ;;  %v128_v33 = vmax.f32 %v114_v25, 0.0 }
  0xe4   :  { %v131_v32 = vmax.f32 %v125_v28, 0.0 }
  0xe5   :  { %v129_v34 = vmax.f32 %v117_v30, 0.0 }
  0xe6   :  { %v137_v35 = vpack.c.bf16 %v131_v32, %v130_v31 }
  0xe7   :  { %v136_v36 = vpack.c.bf16 %v129_v34, %v128_v33 }
  0xe9   :  { %314 = vmatprep.subr.bf16.mxu1 %v136_v36 }
  0xea   :  { %315 = vmatpush3.bf16.msra.mxu1 %v136_v36 }
  0xeb   :  { %316 = vmatprep.subr.bf16.mxu1 %v137_v35 }
  0xee   :  { %317 = vmatpush3.bf16.msra.mxu1 %v137_v35 }
  0xf1   :  { %319 = vmatmul.mubr.msk.bf16.vlgmr.msra.gmra.mrb[0].mxu1 %vm172_vm1, %v330_v37 }
 0x1c4   :  { %v320_v42 = vpop.f32.mrb[0].mxu1 }
 0x1c5   :  { %v222_v44 = vadd.f32 %v320_v42, %v155_v40  ;;  %v213_v45 = vpop.f32.mrb[1].mxu1 }
 0x1c6   :  { %v214_v46 = vadd.f32 %v213_v45, %v145_v38  ;;  %v321_v47 = vpop.f32.mrb[2].mxu1 }
 0x1c7   :  { %v225_v49 = vadd.f32 %v321_v47, %v160_v41  ;;  %v216_v50 = vpop.f32.mrb[3].mxu1  ;;  %v230_v51 = vmax.f32 %v222_v44, 0.0 }
 0x1c8   :  { %v228_v52 = vmax.f32 %v214_v46, 0.0  ;;  %v217_v53 = vadd.f32 %v216_v50, %v150_v39 }
 0x1c9   :  { %v231_v55 = vmax.f32 %v225_v49, 0.0  ;;  %v258_v58 = vmul.f32 %v249_v57, %v230_v51 }
 0x1ca   :  { %v256_v54 = vmul.f32 %v239_v43, %v228_v52  ;;  %v229_v56 = vmax.f32 %v217_v53, 0.0 }
 0x1cb   :  { %v259_v62 = vmul.f32 %v254_v60, %v231_v55  ;;  %v264_v1 = vsel %vm260_vm2, %v258_v58, 0.0 }
 0x1cc   :  { %v257_v59 = vmul.f32 %v244_v48, %v229_v56  ;;  %v261_v61 = vsel %vm260_vm2, %v256_v54, 0.0 }
 0x1cd   :  { %v266_v3 = vsel %vm260_vm2, %v259_v62, 0.0 }
 0x1ce   :  { %v262_v63 = vsel %vm260_vm2, %v257_v59, 0.0 }
 0x1cf   :  { %v263_v0 = vadd.f32 %v262_v63, %v261_v61 }
 0x1d1   :  { %v265_v2 = vadd.f32 %v264_v1, %v263_v0 }
 0x1d3   :  { %v267_v4 = vadd.f32 %v266_v3, %v265_v2 }
 0x1d5   :  { %v268_v5 = vrot.slane %v267_v4, 4 }
 0x1d7   :  { %v269_v6 = vadd.f32 %v268_v5, %v267_v4 }
 0x1d9   :  { %v270_v7 = vrot.slane %v269_v6, 2 }
 0x1db   :  { %v271_v8 = vadd.f32 %v270_v7, %v269_v6 }
 0x1dd   :  { %v272_v9 = vrot.slane %v271_v8, 1 }
 0x1df   :  { %v273_v11 = vadd.f32 %v272_v9, %v271_v8 }
 0x1e1   :  { %v276_v12 = vadd.f32 %v275_v10, %v273_v11 }
 0x1e3   :  { %278 = vst.msk [vmem:[#allocation3] sm:$0x1] %vm277_vm3, %v276_v12 }
 0x1e4   :  { %342 = shalt.err (!%p339_p4)
}
 0x1e5   :  { %s343_s13 = scalar_lea.hbm %s476_s7, 16 }
 0x1e6   :  { %p344_p5 = scmp.ne.s32.totalorder %s476_s7, %s343_s13  ;;  %p347_p6 = scmp.lt.u32.totalorder %s343_s13, %s476_s7 }
 0x1e8   :  { %p349_p7 = pnand %p347_p6, %p344_p5 }
 0x1ea   :  { %352 = shalt.err (!%p349_p7)
}
 0x1eb   :  { %288 = dma.vmem_to_hbm [thread:$0]  %s286_s0, 16, %s476_s7, [#allocation4]  }
 0x1ec   :  { %353 = dma.done.wait [#allocation4], 16  }
 0x1ed   :  { %354 = vsyncadd [#allocation4], 4294967280 }
 0x1ee   :  { %292 = vsyncpa [#allocation4], 1 }

</bundles_post_ra>
